<compile_context>
chip_gen: v7x
topology: tpu7x:2x2x1
jax: 0.10.0
libtpu: 0.0.40
codegen_flags: <defaults>
</compile_context>

<pallas_src>
import functools

import jax
import jax.numpy as jnp
from jax.experimental import pallas as pl
from jax.experimental.pallas import tpu as pltpu


def _round_up(x: int, m: int) -> int:
    return (x + m - 1) // m * m


def _cdiv(a: int, b: int) -> int:
    return (a + b - 1) // b


def _pick_lanes(lanes: int, cap_lanes: int) -> int:
    """Tile size (in 128-lane units) <= cap; prefer exact divisors to avoid padding."""
    cap_lanes = max(1, cap_lanes)
    t = min(cap_lanes, lanes)
    if lanes % t:
        for d in range(t, max(1, t // 2) - 1, -1):
            if lanes % d == 0:
                return d
    return t


def _nk_tiling(out_dim: int, in_dim: int, tn_cap: int, tk_cap: int):
    """Batch-independent (N, K) tiling so the prepared weight can be cached."""
    nl = _round_up(out_dim, 128) // 128
    kl = _round_up(in_dim, 128) // 128
    tn_l = _pick_lanes(nl, tn_cap // 128)
    # v7x megacore: with a single M tile the N axis is the only parallel work;
    # keep >= 2 N tiles whenever N allows so both TensorCores stream half the weight.
    if tn_l == nl and nl >= 2:
        tn_l = _pick_lanes(nl, nl // 2)
    tk_l = _pick_lanes(kl, tk_cap // 128)
    tn, tk = tn_l * 128, tk_l * 128
    Np = _cdiv(nl, tn_l) * tn
    Kp = _cdiv(kl, tk_l) * tk
    return tn, tk, Np, Kp


def _m_tiling(batch: int, tm_cap: int, compute_dtype) -> tuple:
    # bf16 packs two rows per sublane -> round tm to 16 to avoid relayout; f32 -> 8.
    sub = 16 if jnp.dtype(compute_dtype) == jnp.dtype(jnp.bfloat16) else 8
    m_tiles = max(1, _cdiv(batch, tm_cap))
    tm = _round_up(_cdiv(batch, m_tiles), sub)
    Mp = _round_up(batch, tm)
    return tm, Mp


def _matmul_kernel_f32_out(x_ref, w_ref, o_ref):
    # f32 output: accumulate directly in the VMEM-resident output block
    # (output block index ignores k, so it stays resident across the K axis).
    @pl.when(pl.program_id(2) == 0)
    def _():
        o_ref[...] = jnp.zeros_like(o_ref)

    o_ref[...] += jnp.dot(x_ref[...], w_ref[...],
                          preferred_element_type=jnp.float32)


def _matmul_kernel_scratch(x_ref, w_ref, o_ref, acc_ref):
    # Non-f32 output: f32 scratch accumulator, cast + store on the last K step.
    @pl.when(pl.program_id(2) == 0)
    def _():
        acc_ref[...] = jnp.zeros_like(acc_ref)

    acc_ref[...] += jnp.dot(x_ref[...], w_ref[...],
                            preferred_element_type=jnp.float32)

    @pl.when(pl.program_id(2) == pl.num_programs(2) - 1)
    def _():
        o_ref[...] = acc_ref[...].astype(o_ref.dtype)


def prepare_weight(weight: jax.Array, *, compute_dtype=jnp.bfloat16,
                   tn_cap: int = 512, tk_cap: int = 1024) -> jax.Array:
    """One-time layout work (do at parameter setup, NOT per call):
    (out_dim, in_dim) -> transposed, zero-padded, compute-dtype (Kp, Np) RHS."""
    out_dim, in_dim = weight.shape
    _, _, Np, Kp = _nk_tiling(out_dim, in_dim, tn_cap, tk_cap)
    w = jnp.asarray(weight, dtype=compute_dtype).T  # (K, N)
    if (Kp, Np) != (in_dim, out_dim):
        w = jnp.pad(w, ((0, Kp - in_dim), (0, Np - out_dim)))
    return w


@functools.partial(
    jax.jit,
    static_argnames=("out_dim", "compute_dtype", "out_dtype",
                     "tm_cap", "tn_cap", "tk_cap"),
)
def my_linear_prepared(x: jax.Array, w_prepared: jax.Array, *, out_dim: int,
                       compute_dtype=jnp.bfloat16, out_dtype=None,
                       tm_cap: int = 512, tn_cap: int = 512,
                       tk_cap: int = 1024) -> jax.Array:
    """y = x @ weight.T using a weight already processed by prepare_weight()."""
    batch, in_dim = x.shape
    compute_dtype = jnp.dtype(compute_dtype)
    out_dtype = jnp.dtype(out_dtype if out_dtype is not None else x.dtype)

    tn, tk, Np, Kp = _nk_tiling(out_dim, in_dim, tn_cap, tk_cap)
    assert w_prepared.shape == (Kp, Np), (
        "prepared weight does not match (in_dim, out_dim, tn_cap, tk_cap); "
        "re-run prepare_weight with the same settings")
    assert w_prepared.dtype == compute_dtype, "prepared weight dtype mismatch"

    tm, Mp = _m_tiling(batch, tm_cap, compute_dtype)
    grid_m, grid_n, grid_k = Mp // tm, Np // tn, Kp // tk

    x_p = x.astype(compute_dtype)
    if (Mp, Kp) != (batch, in_dim):
        x_p = jnp.pad(x_p, ((0, Mp - batch), (0, Kp - in_dim)))

    in_itemsize = compute_dtype.itemsize
    out_itemsize = out_dtype.itemsize

    x_spec = pl.BlockSpec((tm, tk), lambda i, j, k: (i, k))
    w_spec = pl.BlockSpec((tk, tn), lambda i, j, k: (k, j))
    w_bufs = 2
    if grid_m == 1 and grid_n * grid_k >= 3:
        # Small-batch case: weight streaming is the exposed DMA; a third buffer
        # hides HBM latency jitter.  Fall back silently if unsupported.
        try:
            w_spec = pl.BlockSpec((tk, tn), lambda i, j, k: (k, j),
                                  pipeline_mode=pl.Buffered(3))
            w_bufs = 3
        except (AttributeError, TypeError):
            pass
    o_spec = pl.BlockSpec((tm, tn), lambda i, j, k: (i, j))

    if out_dtype == jnp.dtype(jnp.float32):
        kernel = _matmul_kernel_f32_out
        scratch_shapes = []
        acc_bytes = 0
    else:
        kernel = _matmul_kernel_scratch
        scratch_shapes = [pltpu.VMEM((tm, tn), jnp.float32)]
        acc_bytes = tm * tn * 4

    # Per-step VMEM footprint (double-buffered x/out, w_bufs-buffered weight, + acc).
    footprint = (2 * tm * tk * in_itemsize
                 + w_bufs * tk * tn * in_itemsize
                 + 2 * tm * tn * out_itemsize
                 + acc_bytes)
    # 32 MiB fits the default caps with headroom and is <= physical VMEM on every
    # generation (v5e/v6e 128 MiB, v7x 64 MiB); v5e's scoped default is only 16 MiB,
    # so set it explicitly.
    vmem_limit = max(32 * 1024 * 1024, int(1.5 * footprint))

    cost = pl.CostEstimate(
        flops=2 * Mp * Np * Kp,
        transcendentals=0,
        # Real HBM traffic: x streamed once per N tile, w once per M tile.
        bytes_accessed=(Mp * Kp * in_itemsize * grid_n
                        + Kp * Np * in_itemsize * grid_m
                        + Mp * Np * out_itemsize),
    )

    out_p = pl.pallas_call(
        kernel,
        out_shape=jax.ShapeDtypeStruct((Mp, Np), out_dtype),
        grid_spec=pltpu.PrefetchScalarGridSpec(
            num_scalar_prefetch=0,
            grid=(grid_m, grid_n, grid_k),
            in_specs=[x_spec, w_spec],
            out_specs=o_spec,
            scratch_shapes=scratch_shapes,
        ),
        compiler_params=pltpu.CompilerParams(
            dimension_semantics=("parallel", "parallel", "arbitrary"),
            vmem_limit_bytes=vmem_limit,
        ),
        cost_estimate=cost,
    )(x_p, w_prepared)

    return out_p[:batch, :out_dim]


class MyLinearPallas:
    """Pallas analogue of MyLinear: holds the (out_dim, in_dim) weight, caches the
    transposed/padded compute-dtype RHS once, and applies y = x @ weight.T."""

    def __init__(self, weight: jax.Array, *, compute_dtype=jnp.bfloat16,
                 out_dtype=None, tm_cap: int = 512, tn_cap: int = 512,
                 tk_cap: int = 1024):
        self.out_dim, self.in_dim = weight.shape
        self.compute_dtype = jnp.dtype(compute_dtype)
        self.out_dtype = out_dtype
        self.tm_cap, self.tn_cap, self.tk_cap = tm_cap, tn_cap, tk_cap
        # One-time layout work (previously repeated on every forward call).
        self.w_prepared = jax.device_put(prepare_weight(
            weight, compute_dtype=self.compute_dtype,
            tn_cap=tn_cap, tk_cap=tk_cap))

    def __call__(self, x: jax.Array) -> jax.Array:
        return my_linear_prepared(
            x, self.w_prepared, out_dim=self.out_dim,
            compute_dtype=self.compute_dtype, out_dtype=self.out_dtype,
            tm_cap=self.tm_cap, tn_cap=self.tn_cap, tk_cap=self.tk_cap)


if __name__ == "__main__":
    # Deterministic synthetic parameters / inputs (torch.empty is uninitialized,
    # so any deterministic init is faithful to the module spec).
    key = jax.random.PRNGKey(0)
    k_x, k_w, k_x2, k_w2 = jax.random.split(key, 4)

    # --- 1) Small shapes, exact f32 compute path (batch=2, in_dim=32, out_dim=16). ---
    batch, in_dim, out_dim = 2, 32, 16
    x = jax.random.uniform(k_x, (batch, in_dim), dtype=jnp.float32)      # mirrors torch.rand
    weight = jax.random.normal(k_w, (out_dim, in_dim), dtype=jnp.float32) * 0.02

    lin_f32 = MyLinearPallas(weight, compute_dtype=jnp.float32)
    y = jax.block_until_ready(lin_f32(x))
    y_ref = x @ weight.T
    assert y.shape == (batch, out_dim)
    assert jnp.allclose(y, y_ref, atol=1e-5, rtol=1e-5), "f32 path mismatch vs reference"

    # --- 2) bf16 compute / bf16 output, multiple K tiles + padding (small caps force tiling,
    #        exercises the f32-scratch accumulator and the Buffered(3) weight stream). ---
    b2, k2, n2 = 16, 640, 200
    x2 = jax.random.uniform(k_x2, (b2, k2), dtype=jnp.float32)
    w2 = jax.random.normal(k_w2, (n2, k2), dtype=jnp.float32) * 0.02
    lin_bf16 = MyLinearPallas(w2, compute_dtype=jnp.bfloat16, out_dtype=jnp.bfloat16,
                              tm_cap=128, tn_cap=128, tk_cap=256)
    y2 = jax.block_until_ready(lin_bf16(x2))
    y2_ref = jnp.dot(x2.astype(jnp.bfloat16), w2.astype(jnp.bfloat16).T,
                     preferred_element_type=jnp.float32)
    assert y2.shape == (b2, n2)
    assert jnp.allclose(y2.astype(jnp.float32), y2_ref, atol=2e-2, rtol=2e-2), \
        "bf16 path mismatch vs reference"

    # --- 3) f32 compute / f32 output with multiple K tiles (direct-in-output accumulation). ---
    lin_f32_tiled = MyLinearPallas(w2, compute_dtype=jnp.float32,
                                   tm_cap=128, tn_cap=128, tk_cap=256)
    y3 = jax.block_until_ready(lin_f32_tiled(x2))
    y3_ref = x2 @ w2.T
    assert jnp.allclose(y3, y3_ref, atol=1e-4, rtol=1e-4), "tiled f32 path mismatch"

    print("KERNEL_OK")
</pallas_src>

<mosaic_0001>
module attributes {stable_mosaic.version = 11 : i64} {
  func.func @_matmul_kernel_f32_out(%arg0: i32, %arg1: i32, %arg2: i32, %arg3: memref<8x128xf32, #tpu.memory_space<vmem>>, %arg4: memref<128x128xf32, #tpu.memory_space<vmem>>, %arg5: memref<8x128xf32, #tpu.memory_space<vmem>>) attributes {dimension_semantics = [#tpu.dimension_semantics<parallel>, #tpu.dimension_semantics<parallel>, #tpu.dimension_semantics<arbitrary>], iteration_bounds = array<i64: 1, 1, 1>, scalar_prefetch = 0 : i64, scratch_operands = 0 : i64, tpu.core_type = #tpu.core_type<tc>, window_params = [{transform_indices = @transform_0, window_bounds = array<i64: 8, 128>}, {transform_indices = @transform_1, window_bounds = array<i64: 128, 128>}, {transform_indices = @transform_2, window_bounds = array<i64: 8, 128>}]} {
    %c0_i32 = arith.constant 0 : i32
    %0 = arith.cmpi eq, %arg2, %c0_i32 : i32
    %1 = arith.extui %0 : i1 to i32
    %c0_i32_0 = arith.constant 0 : i32
    %2 = arith.cmpi ne, %1, %c0_i32_0 : i32
    scf.if %2 {
      %cst_8 = arith.constant 0.000000e+00 : f32
      %9 = vector.broadcast %cst_8 : f32 to vector<8x128xf32>
      %c0_9 = arith.constant 0 : index
      %c0_10 = arith.constant 0 : index
      %10 = vector.load %arg5[%c0_9, %c0_10] : memref<8x128xf32, #tpu.memory_space<vmem>>, vector<8x128xf32>
      tpu.vector_store %arg5[%c0_9, %c0_10], %9 {strides = array<i32>} : memref<8x128xf32, #tpu.memory_space<vmem>>, vector<8x128xf32>,
    } else {
    }
    %c0 = arith.constant 0 : index
    %c0_1 = arith.constant 0 : index
    %3 = vector.load %arg5[%c0, %c0_1] : memref<8x128xf32, #tpu.memory_space<vmem>>, vector<8x128xf32>
    %c0_2 = arith.constant 0 : index
    %c0_3 = arith.constant 0 : index
    %4 = vector.load %arg3[%c0_2, %c0_3] : memref<8x128xf32, #tpu.memory_space<vmem>>, vector<8x128xf32>
    %c0_4 = arith.constant 0 : index
    %c0_5 = arith.constant 0 : index
    %5 = vector.load %arg4[%c0_4, %c0_5] : memref<128x128xf32, #tpu.memory_space<vmem>>, vector<128x128xf32>
    %cst = arith.constant dense<0.000000e+00> : vector<8x128xf32>
    %6 = tpu.matmul %4, %5, %cst {dimension_numbers = #tpu.dot_dimension_numbers<[1], [0], [0], [1], [0, 0, 1, 1], [], []>} : vector<8x128xf32>, vector<128x128xf32>, vector<8x128xf32> -> vector<8x128xf32>
    %7 = arith.addf %3, %6 : vector<8x128xf32>
    %c0_6 = arith.constant 0 : index
    %c0_7 = arith.constant 0 : index
    %8 = vector.load %arg5[%c0_6, %c0_7] : memref<8x128xf32, #tpu.memory_space<vmem>>, vector<8x128xf32>
    tpu.vector_store %arg5[%c0_6, %c0_7], %7 {strides = array<i32>} : memref<8x128xf32, #tpu.memory_space<vmem>>, vector<8x128xf32>,
    return
  }
  func.func @transform_0(%arg0: i32, %arg1: i32, %arg2: i32) -> (i32, i32) {
    %c0_i32 = arith.constant 0 : i32
    return %arg0, %arg2 : i32, i32
  }
  func.func @transform_1(%arg0: i32, %arg1: i32, %arg2: i32) -> (i32, i32) {
    %c0_i32 = arith.constant 0 : i32
    return %arg2, %arg1 : i32, i32
  }
  func.func @transform_2(%arg0: i32, %arg1: i32, %arg2: i32) -> (i32, i32) {
    %c0_i32 = arith.constant 0 : i32
    return %arg0, %arg1 : i32, i32
  }
}

</mosaic_0001>

<bundles_post_ra>
// kernel: my_linear_prepared.1
= control target key start
LH: loop header
LB: loop body
LE: loop exit
PB: predicated region body
PF: predicated region fallthrough
CT: control target
= control target key end

     0   :  { %7 = vsyncpa [#allocation3], 0  ;;  %s231_s9 = smov [#allocation2]   ;;  %s270_s0 = inlined_call_operand.vmem [shape: f32[8,128], index: 0, kind: input, shape index: {}]   ;;  %s271_s1 = inlined_call_operand.hbm [shape: f32[128,128], index: 1, kind: input, shape index: {}]   ;;  %s272_s2 = inlined_call_operand.vmem [shape: f32[8,128], index: 2, kind: output, shape index: {}]  }
   0x1   :  { %s15_s10 = sshll.u32 %s231_s9, 4  ;;  %s207_s13 = scalar_lea.hbm %s271_s1, 2048  ;;  %s16_s10 = int_to_ptr.vmem [resolvable:$true] %s15_s10 }
   0x2   :  { %p208_p0 = scmp.ne.s32.totalorder %s271_s1, %s207_s13  ;;  %p211_p1 = scmp.lt.u32.totalorder %s207_s13, %s271_s1 }
   0x4   :  { %p213_p2 = pnand %p211_p1, %p208_p0 }
   0x6   :  { %216 = shalt.err (!%p213_p2)
}
   0x7   :  { %s217_s18 = scalar_lea.vmem %s16_s10, 2048  ;;  %p222_p4 = scmp.lt.s32.totalorder %s16_s10, %s16_s10 }
   0x8   :  { %p218_p3 = scmp.ne.s32.totalorder %s16_s10, %s217_s18  ;;  %p223_p5 = scmp.lt.s32.totalorder %s217_s18, %s217_s18 }
   0xa   :  { %p224_p6 = por %p223_p5, %p222_p4 }
   0xc   :  { %p225_p7 = pnand %p224_p6, %p218_p3 }
   0xe   :  { %228 = shalt.err (!%p225_p7)
}
   0xf   :  { %s232_s19 = smov 128   ;;  %s233_s20 = smov 8  }
  0x10   :  { %21 = dma.hbm_to_vmem [thread:$0]  %s271_s1, 2048, %s16_s10, [#allocation3], %s232_s19, %s232_s19, %s233_s20  }
  0x11   :  { %229 = dma.done.wait [#allocation3], 2048  }
  0x12   :  { %230 = vsyncadd [#allocation3], 4294965248  ;;  %v234_v0 = vmov 0.0|0.0   ;;  %vm235_vm0 = vmmov 0   ;;  %v236_v1 = vmov 0.0   ;;  %v32_v2 = vld [vmem:[#allocation2] sm:$0xff] }
  0x13   :  { %177 = vmatprep.subr.bf16.mxu0 %v234_v0  ;;  %174 = vmatprep.mubr.msk.f32.mxu0 %vm235_vm0, %v236_v1  ;;  %v33_v3 = vld [vmem:[#allocation2 + $0x8] sm:$0xff]  ;;  %v34_v4 = vld [vmem:[#allocation2 + $0x10] sm:$0xff]  ;;  %v35_v6 = vld [vmem:[#allocation2 + $0x18] sm:$0xff] }
  0x14   :  { %v178_v5 = vpack.c.bf16 %v33_v3, %v32_v2  ;;  %v181_v7 = vpack.c.bf16 %v35_v6, %v34_v4  ;;  %v36_v8 = vld [vmem:[#allocation2 + $0x20] sm:$0xff]  ;;  %v37_v9 = vld [vmem:[#allocation2 + $0x28] sm:$0xff]  ;;  %v38_v11 = vld [vmem:[#allocation2 + $0x30] sm:$0xff] }
  0x15   :  { %v184_v10 = vpack.c.bf16 %v37_v9, %v36_v8  ;;  %v39_v12 = vld [vmem:[#allocation2 + $0x38] sm:$0xff]  ;;  %v40_v14 = vld [vmem:[#allocation2 + $0x40] sm:$0xff]  ;;  %v41_v15 = vld [vmem:[#allocation2 + $0x48] sm:$0xff] }
  0x16   :  { %179 = vmatpush3.bf16.msra.mxu0 %v178_v5  ;;  %v187_v13 = vpack.c.bf16 %v39_v12, %v38_v11  ;;  %v190_v16 = vpack.c.bf16 %v41_v15, %v40_v14  ;;  %v42_v17 = vld [vmem:[#allocation2 + $0x50] sm:$0xff]  ;;  %v43_v18 = vld [vmem:[#allocation2 + $0x58] sm:$0xff]  ;;  %v44_v20 = vld [vmem:[#allocation2 + $0x60] sm:$0xff] }
  0x17   :  { %180 = vmatprep.subr.bf16.mxu0 %v234_v0  ;;  %v193_v19 = vpack.c.bf16 %v43_v18, %v42_v17  ;;  %v45_v21 = vld [vmem:[#allocation2 + $0x68] sm:$0xff]  ;;  %v46_v23 = vld [vmem:[#allocation2 + $0x70] sm:$0xff]  ;;  %v47_v24 = vld [vmem:[#allocation2 + $0x78] sm:$0xff] }
  0x18   :  { %v196_v22 = vpack.c.bf16 %v45_v21, %v44_v20  ;;  %v199_v25 = vpack.c.bf16 %v47_v24, %v46_v23  ;;  %v31_v26 = vld [vmem:[%s270_s0] sm:$0xff] }
  0x1a   :  { %182 = vmatpush3.bf16.msra.mxu0 %v181_v7 }
  0x1b   :  { %183 = vmatprep.subr.bf16.mxu0 %v234_v0 }
  0x1e   :  { %185 = vmatpush3.bf16.msra.mxu0 %v184_v10 }
  0x1f   :  { %186 = vmatprep.subr.bf16.mxu0 %v234_v0 }
  0x22   :  { %188 = vmatpush3.bf16.msra.mxu0 %v187_v13 }
  0x23   :  { %189 = vmatprep.subr.bf16.mxu0 %v234_v0 }
  0x26   :  { %191 = vmatpush3.bf16.msra.mxu0 %v190_v16 }
  0x27   :  { %192 = vmatprep.subr.bf16.mxu0 %v234_v0 }
  0x2a   :  { %194 = vmatpush3.bf16.msra.mxu0 %v193_v19 }
  0x2b   :  { %195 = vmatprep.subr.bf16.mxu0 %v234_v0 }
  0x2e   :  { %197 = vmatpush3.bf16.msra.mxu0 %v196_v22 }
  0x2f   :  { %198 = vmatprep.subr.bf16.mxu0 %v234_v0 }
  0x32   :  { %200 = vmatpush3.bf16.msra.mxu0 %v199_v25 }
  0x35   :  { %175 = vmatmul.mubr.f32.vlgmr.msra.gmra.mrb[0].mxu0 %v31_v26 }
 0x108   :  { %v114_v27 = vpop.f32.mrb[0].mxu0 }
 0x109   :  { %v176_v28 = vpop.f32.mrb[1].mxu0  ;;  %119 = vst [vmem:[%s272_s2] sm:$0xff] %v114_v27 }
 0x10a   :  { %124 = vsyncpa [#allocation3], 1 }

</bundles_post_ra>
